<compile_context>
chip_gen: v5e
topology: v5e:2x2
jax: 0.10.0
libtpu: 0.0.40
codegen_flags: <defaults>
</compile_context>

<pallas_src>
import functools
import math

import jax
import jax.numpy as jnp
from jax.experimental import pallas as pl
from jax.experimental.pallas import tpu as pltpu


# ----------------------------------------------------------------------------
# LayerNorm math shared by all kernels (runs on one (block_rows, F) f32 tile)
# ----------------------------------------------------------------------------
def _ln_core(x, a, b, *, eps, approx, one_pass):
    n = x.shape[-1]
    if one_pass:
        # One pass over x: s1 = sum(x), s2 = sum(x^2).  Fewer live full-tile
        # temps (no `diff` kept across two reductions); guard the tiny
        # cancellation-induced negatives (also covers tail-pad garbage rows).
        s1 = jnp.sum(x, axis=-1, keepdims=True)
        s2 = jnp.sum(x * x, axis=-1, keepdims=True)
        mean = s1 * (1.0 / n)
        var = (s2 - n * (mean * mean)) * (1.0 / (n - 1))
        var = jnp.maximum(var, 0.0)
    else:
        # Two-pass (reference numerics).
        mean = jnp.mean(x, axis=-1, keepdims=True)
        d = x - mean
        var = jnp.sum(d * d, axis=-1, keepdims=True) * (1.0 / (n - 1))
    std = jnp.sqrt(var)
    denom = std + eps
    diff = x - mean
    if approx:
        # EUP reciprocal: separate VLIW slot.  Opt-in (visible ~1e-2 error).
        y = a * (diff * pl.reciprocal(denom, approx=True)) + b
    else:
        y = a * (diff / denom) + b
    return y


# ----------------------------------------------------------------------------
# Pallas kernels
# ----------------------------------------------------------------------------
def _ln_kernel(x_ref, a_ref, b_ref, o_ref, *, eps, approx, one_pass):
    x = x_ref[...].astype(jnp.float32)
    y = _ln_core(x, a_ref[...], b_ref[...], eps=eps, approx=approx,
                 one_pass=one_pass)
    o_ref[...] = y.astype(o_ref.dtype)


def _add_ln_kernel(x_ref, d_ref, a_ref, b_ref, xo_ref, no_ref,
                   *, eps, approx, one_pass):
    # Fused residual: x_new = x + delta, nx = LN(x_new), one HBM pass.
    x = x_ref[...].astype(jnp.float32) + d_ref[...].astype(jnp.float32)
    xo_ref[...] = x.astype(xo_ref.dtype)
    y = _ln_core(x, a_ref[...], b_ref[...], eps=eps, approx=approx,
                 one_pass=one_pass)
    no_ref[...] = y.astype(no_ref.dtype)


def _add_ln_rowsum_kernel(x_ref, d_ref, a_ref, b_ref, s_ref,
                          *, eps, approx, one_pass):
    # Fused residual + LN + per-row sum: the full normalized tensor never
    # goes back to HBM (only a (rows, 1) column does).
    x = x_ref[...].astype(jnp.float32) + d_ref[...].astype(jnp.float32)
    y = _ln_core(x, a_ref[...], b_ref[...], eps=eps, approx=approx,
                 one_pass=one_pass)
    s_ref[...] = jnp.sum(y, axis=-1, keepdims=True).astype(s_ref.dtype)


# ----------------------------------------------------------------------------
# Tiling / VMEM heuristics
# ----------------------------------------------------------------------------
_SAFE_VMEM_CAP = 44 * 1024 * 1024  # <= per-TC VMEM on every gen (v7x: 64 MiB)


def _round_up(v, m):
    return ((v + m - 1) // m) * m


def _vmem_budget_bytes():
    """Per-TensorCore-safe VMEM budget.

    get_tpu_info() may report per-chip capacity; on v7x (2 TCs/chip, 64 MiB
    each) that would be 128 MiB and 3/4 of it would exceed physical per-TC
    VMEM.  Hard-cap at 44 MiB so the limit is valid on v5e/v6e/v7x alike.
    """
    try:
        cap = int(pltpu.get_tpu_info().vmem_capacity_bytes)
    except Exception:
        cap = 0
    if cap <= 0:
        cap = 64 * 1024 * 1024
    return int(min(cap * 3 // 4, _SAFE_VMEM_CAP))


def _sublane_multiple(*dtypes):
    """Packed-sublane multiple: 8 for f32, 16 for bf16, 32 for int8/fp8."""
    m = 8
    for dt in dtypes:
        its = max(1, jnp.dtype(dt).itemsize)
        m = max(m, 32 // its)
    return m


def _auto_block_rows(rows, features, *, in_itemsizes, out_itemsizes,
                     vmem_budget, sublane, min_grid=4, max_rows=1024):
    """Pick block_rows: large (512-1024) streaming tiles, but
       - fits double-buffered IO + ~20 B/elem live f32 temps in ~80% of budget
       - keeps >= ~min_grid grid steps (pipeline overlap + v7x megacore split)
       - multiple of the packed sublane size."""
    per_row = features * (2 * sum(in_itemsizes) + 2 * sum(out_itemsizes) + 20)
    usable = int(vmem_budget * 0.8)           # headroom for compiler scratch
    max_rows_by_vmem = max(sublane, usable // max(per_row, 1))
    target_for_grid = _round_up(max(1, pl.cdiv(rows, min_grid)), sublane)
    br = min(max_rows, max_rows_by_vmem, target_for_grid)
    return max(sublane, (br // sublane) * sublane)


def _ln_pallas_call(kernel, n_dense_in, n_dense_out, rows, features,
                    block_rows, out_shapes, vmem_budget, eps, approx, one_pass):
    """Build the pallas_call for an LN-family kernel.

    Block layout: dense (block_rows, F) tiles for activations, broadcast
    (1, F) tiles for the params.  Feature axis is ALWAYS fully resident
    (reduction axis) — see invariant at top of file.
    """
    dense_spec = pl.BlockSpec((block_rows, features), lambda i: (i, 0))
    param_spec = pl.BlockSpec((1, features), lambda i: (0, 0))
    in_specs = [dense_spec] * n_dense_in + [param_spec, param_spec]
    out_specs = tuple(
        pl.BlockSpec((block_rows, s.shape[-1]), lambda i: (i, 0))
        for s in out_shapes)
    if len(out_shapes) == 1:
        out_shape, out_specs = out_shapes[0], out_specs[0]
    else:
        out_shape = tuple(out_shapes)
    return pl.pallas_call(
        functools.partial(kernel, eps=eps, approx=approx, one_pass=one_pass),
        out_shape=out_shape,
        grid_spec=pltpu.PrefetchScalarGridSpec(
            num_scalar_prefetch=0,
            grid=(pl.cdiv(rows, block_rows),),
            in_specs=in_specs,
            out_specs=out_specs),
        compiler_params=pltpu.CompilerParams(
            dimension_semantics=("parallel",),
            vmem_limit_bytes=int(vmem_budget)),
    )


# ----------------------------------------------------------------------------
# Public wrappers
# ----------------------------------------------------------------------------
def layer_norm(x, a_2, b_2, eps=1e-6, block_rows=None,
               approx_reciprocal=False, one_pass=True):
    """LN(x).  x: (..., F); a_2, b_2: (F,)."""
    orig_shape = x.shape
    f = orig_shape[-1]
    x2d = x.reshape(-1, f)
    rows = x2d.shape[0]
    budget = _vmem_budget_bytes()
    sub = _sublane_multiple(x.dtype)
    if block_rows is None:
        block_rows = _auto_block_rows(
            rows, f, in_itemsizes=(x.dtype.itemsize,),
            out_itemsizes=(x.dtype.itemsize,), vmem_budget=budget, sublane=sub)
    a2d = a_2.astype(jnp.float32).reshape(1, f)
    b2d = b_2.astype(jnp.float32).reshape(1, f)
    out = _ln_pallas_call(
        _ln_kernel, 1, 1, rows, f, block_rows,
        [jax.ShapeDtypeStruct((rows, f), x.dtype)],
        budget, eps, approx_reciprocal, one_pass,
    )(x2d, a2d, b2d)
    return out.reshape(orig_shape)


def add_layer_norm(x, delta, a_2, b_2, eps=1e-6, block_rows=None,
                   approx_reciprocal=False, one_pass=True):
    """Fused residual + LN: returns (x + delta, LN(x + delta))."""
    assert x.shape == delta.shape
    orig_shape = x.shape
    f = orig_shape[-1]
    x2d = x.reshape(-1, f)
    d2d = delta.reshape(-1, f)
    rows = x2d.shape[0]
    budget = _vmem_budget_bytes()
    sub = _sublane_multiple(x.dtype, delta.dtype)
    if block_rows is None:
        block_rows = _auto_block_rows(
            rows, f,
            in_itemsizes=(x.dtype.itemsize, delta.dtype.itemsize),
            out_itemsizes=(x.dtype.itemsize, x.dtype.itemsize),
            vmem_budget=budget, sublane=sub)
    a2d = a_2.astype(jnp.float32).reshape(1, f)
    b2d = b_2.astype(jnp.float32).reshape(1, f)
    x_new, nx = _ln_pallas_call(
        _add_ln_kernel, 2, 2, rows, f, block_rows,
        [jax.ShapeDtypeStruct((rows, f), x.dtype),
         jax.ShapeDtypeStruct((rows, f), x.dtype)],
        budget, eps, approx_reciprocal, one_pass,
    )(x2d, d2d, a2d, b2d)
    return x_new.reshape(orig_shape), nx.reshape(orig_shape)


def add_layer_norm_rowsum(x, delta, a_2, b_2, eps=1e-6, block_rows=None,
                          approx_reciprocal=False, one_pass=True):
    """Fused residual + LN + row sum: returns sum_{-1}(LN(x + delta))."""
    assert x.shape == delta.shape
    orig_shape = x.shape
    f = orig_shape[-1]
    x2d = x.reshape(-1, f)
    d2d = delta.reshape(-1, f)
    rows = x2d.shape[0]
    budget = _vmem_budget_bytes()
    sub = _sublane_multiple(x.dtype, delta.dtype)
    if block_rows is None:
        block_rows = _auto_block_rows(
            rows, f,
            in_itemsizes=(x.dtype.itemsize, delta.dtype.itemsize),
            out_itemsizes=(4,),  # (rows, 1) f32 column, negligible
            vmem_budget=budget, sublane=sub)
    a2d = a_2.astype(jnp.float32).reshape(1, f)
    b2d = b_2.astype(jnp.float32).reshape(1, f)
    s = _ln_pallas_call(
        _add_ln_rowsum_kernel, 2, 1, rows, f, block_rows,
        [jax.ShapeDtypeStruct((rows, 1), jnp.float32)],
        budget, eps, approx_reciprocal, one_pass,
    )(x2d, d2d, a2d, b2d)
    return s.reshape(orig_shape[:-1])


def _layer_norm_ref(x, a_2, b_2, eps=1e-6):
    """Pure-JAX reference of the same formula (torch.std semantics)."""
    mean = jnp.mean(x, axis=-1, keepdims=True)
    var = jnp.sum((x - mean) ** 2, axis=-1, keepdims=True) / (x.shape[-1] - 1)
    std = jnp.sqrt(var)
    return a_2 * (x - mean) / (std + eps) + b_2


# ----------------------------------------------------------------------------
# GPT2Simple forward pass (eval mode) around the Pallas LayerNorm kernels
# ----------------------------------------------------------------------------
# TODO(synk): dropout layers (attention / sublayer / FFN) are treated as
#             inference-mode identity — no torch-RNG-compatible Pallas dropout.
# TODO(synk): attention and feed-forward matmuls are left to XLA einsum/matmul;
#             a Pallas MXU path would need bf16 inputs with 128/256-aligned
#             M/N/K tiles and batched per-head contractions.
def _linear(p, x):
    return jnp.matmul(x, p["w"]) + p["b"]


def _attention(q, k, v):
    d_k = q.shape[-1]
    scores = jnp.einsum("bhqd,bhkd->bhqk", q, k) / math.sqrt(d_k)
    p_attn = jax.nn.softmax(scores, axis=-1)
    return jnp.einsum("bhqk,bhkd->bhqd", p_attn, v)


def _multi_head_attention(p, h, query, key, value):
    nb = query.shape[0]
    d_model = query.shape[-1]
    d_k = d_model // h

    def split_heads(y):
        return y.reshape(nb, -1, h, d_k).transpose(0, 2, 1, 3)

    q = split_heads(_linear(p["wq"], query))
    k = split_heads(_linear(p["wk"], key))
    v = split_heads(_linear(p["wv"], value))
    x = _attention(q, k, v)
    x = x.transpose(0, 2, 1, 3).reshape(nb, -1, h * d_k)
    return _linear(p["wo"], x)


def _feed_forward(p, x):
    return _linear(p["w2"], jax.nn.relu(_linear(p["w1"], x)))


def _decoder_layer(p, x, pending, h, ln_kwargs):
    # `pending` is the not-yet-added output of the previous sublayer; the add
    # is fused into this sublayer's LayerNorm (saves one HBM round trip).
    if pending is None:
        nx = layer_norm(x, p["ln_a"][0], p["ln_b"][0], **ln_kwargs)
    else:
        x, nx = add_layer_norm(x, pending, p["ln_a"][0], p["ln_b"][0],
                               **ln_kwargs)
    m = jnp.sqrt(1.0 - x)                      # layer-input x, as in PyTorch
    d = _multi_head_attention(p["self_attn"], h, nx, nx, nx)
    x, nx = add_layer_norm(x, d, p["ln_a"][1], p["ln_b"][1], **ln_kwargs)
    d = _multi_head_attention(p["src_attn"], h, nx, m, m)
    x, nx = add_layer_norm(x, d, p["ln_a"][2], p["ln_b"][2], **ln_kwargs)
    d = _feed_forward(p["ff"], nx)
    return x, d


def gpt2_simple_forward(params, x, *, h, **ln_kwargs):
    pending = None
    for lp in params["layers"]:
        x, pending = _decoder_layer(lp, x, pending, h, ln_kwargs)
    if pending is None:   # zero-layer degenerate case
        return layer_norm(x, params["norm_a"], params["norm_b"],
                          **ln_kwargs).sum(-1)
    # Final residual add + final norm + .sum(-1) all in one pallas_call.
    return add_layer_norm_rowsum(x, pending, params["norm_a"],
                                 params["norm_b"], **ln_kwargs)


# Pure-JAX reference forward (unfused, reference LN) for validation.
def _decoder_layer_ref(p, x, h):
    m = jnp.sqrt(1.0 - x)
    nx = _layer_norm_ref(x, p["ln_a"][0], p["ln_b"][0])
    x = x + _multi_head_attention(p["self_attn"], h, nx, nx, nx)
    nx = _layer_norm_ref(x, p["ln_a"][1], p["ln_b"][1])
    x = x + _multi_head_attention(p["src_attn"], h, nx, m, m)
    nx = _layer_norm_ref(x, p["ln_a"][2], p["ln_b"][2])
    return x + _feed_forward(p["ff"], nx)


def gpt2_simple_forward_ref(params, x, *, h):
    for lp in params["layers"]:
        x = _decoder_layer_ref(lp, x, h)
    return _layer_norm_ref(x, params["norm_a"], params["norm_b"]).sum(-1)


# ----------------------------------------------------------------------------
# Deterministic parameter construction
# ----------------------------------------------------------------------------
def _init_linear(key, d_in, d_out, dtype=jnp.float32):
    return {"w": 0.02 * jax.random.normal(key, (d_in, d_out), dtype),
            "b": jnp.zeros((d_out,), dtype)}


def _init_attention(key, d_model):
    kq, kk, kv, ko = jax.random.split(key, 4)
    return {"wq": _init_linear(kq, d_model, d_model),
            "wk": _init_linear(kk, d_model, d_model),
            "wv": _init_linear(kv, d_model, d_model),
            "wo": _init_linear(ko, d_model, d_model)}


def _init_layer(key, d_model, d_ff):
    k1, k2, k3, k4 = jax.random.split(key, 4)
    return {"self_attn": _init_attention(k1, d_model),
            "src_attn": _init_attention(k2, d_model),
            "ff": {"w1": _init_linear(k3, d_model, d_ff),
                   "w2": _init_linear(k4, d_ff, d_model)},
            "ln_a": [jnp.ones((d_model,), jnp.float32) for _ in range(3)],
            "ln_b": [jnp.zeros((d_model,), jnp.float32) for _ in range(3)]}


def init_gpt2_simple(key, n_layers, d_model, d_ff):
    keys = jax.random.split(key, n_layers)
    return {"layers": [_init_layer(k, d_model, d_ff) for k in keys],
            "norm_a": jnp.ones((d_model,), jnp.float32),
            "norm_b": jnp.zeros((d_model,), jnp.float32)}


# ----------------------------------------------------------------------------
if __name__ == "__main__":
    key = jax.random.PRNGKey(0)
    k_x, k_p, k_a, k_b, k_d = jax.random.split(key, 5)

    # Small but representative: d_model lane-dense (multiple of 128) like real
    # GPT-2 widths; rows = batch*seq = 16 -> block_rows=8, grid=(2,).
    batch, seq, d_model, h, n_layers = 2, 8, 128, 4, 2
    d_ff = 4 * d_model

    # x in (-1, 0] keeps m = sqrt(1 - x) real through every decoder layer
    # (the PyTorch module NaNs otherwise; we just avoid that regime).
    x = jax.random.uniform(k_x, (batch, seq, d_model), jnp.float32,
                           minval=-1.0, maxval=0.0)
    params = init_gpt2_simple(k_p, n_layers, d_model, d_ff)

    a2 = 1.0 + 0.1 * jax.random.normal(k_a, (d_model,), jnp.float32)
    b2 = 0.1 * jax.random.normal(k_b, (d_model,), jnp.float32)
    delta = 0.05 * jax.random.normal(k_d, (batch, seq, d_model), jnp.float32)

    # --- 1) Plain LayerNorm kernel vs. pure-JAX reference --------------------
    ref = _layer_norm_ref(x, a2, b2)
    y_exact = jax.block_until_ready(
        layer_norm(x, a2, b2, one_pass=False, approx_reciprocal=False))
    assert jnp.allclose(y_exact, ref, atol=1e-5, rtol=1e-5)

    y_onepass = jax.block_until_ready(layer_norm(x, a2, b2, one_pass=True))
    assert jnp.allclose(y_onepass, ref, atol=1e-4, rtol=1e-4)

    y_approx = jax.block_until_ready(
        layer_norm(x, a2, b2, approx_reciprocal=True))
    assert jnp.allclose(y_approx, ref, atol=5e-2, rtol=5e-2)

    # --- 2) Fused residual-add + LayerNorm ------------------------------------
    xr = x + delta
    ref_nx = _layer_norm_ref(xr, a2, b2)
    xo, nxo = add_layer_norm(x, delta, a2, b2, one_pass=False)
    jax.block_until_ready(nxo)
    assert jnp.allclose(xo, xr, atol=1e-6, rtol=1e-6)
    assert jnp.allclose(nxo, ref_nx, atol=1e-5, rtol=1e-5)

    # --- 3) Fused residual-add + LayerNorm + row-sum --------------------------
    s = jax.block_until_ready(
        add_layer_norm_rowsum(x, delta, a2, b2, one_pass=False))
    assert s.shape == (batch, seq)
    assert jnp.allclose(s, ref_nx.sum(-1), atol=1e-3, rtol=1e-3)

    # --- 4) Full GPT2Simple forward (fused Pallas path) vs. pure-JAX ---------
    out = jax.block_until_ready(gpt2_simple_forward(params, x, h=h))
    out_ref = gpt2_simple_forward_ref(params, x, h=h)
    assert out.shape == (batch, seq)
    assert bool(jnp.isfinite(out).all())
    # Output is a sum over the final normalized axis (~0 with unit gain /
    # zero bias); only fp-level differences between fused-Pallas and XLA LN.
    assert jnp.allclose(out, out_ref, atol=0.05, rtol=0.0)

    print("KERNEL_OK")
</pallas_src>

<mosaic_0001>
module attributes {stable_mosaic.version = 11 : i64} {
  func.func @_ln_kernel(%arg0: i32, %arg1: memref<8x128xf32, #tpu.memory_space<vmem>>, %arg2: memref<1x128xf32, #tpu.memory_space<vmem>>, %arg3: memref<1x128xf32, #tpu.memory_space<vmem>>, %arg4: memref<8x128xf32, #tpu.memory_space<vmem>>) attributes {dimension_semantics = [#tpu.dimension_semantics<parallel>], iteration_bounds = array<i64: 2>, scalar_prefetch = 0 : i64, scratch_operands = 0 : i64, tpu.core_type = #tpu.core_type<tc>, window_params = [{transform_indices = @transform_0, window_bounds = array<i64: 8, 128>}, {pipeline_mode = #tpu.pipeline_mode<synchronous>, transform_indices = @transform_1, window_bounds = array<i64: 1, 128>}, {pipeline_mode = #tpu.pipeline_mode<synchronous>, transform_indices = @transform_2, window_bounds = array<i64: 1, 128>}, {transform_indices = @transform_3, window_bounds = array<i64: 8, 128>}]} {
    %c0 = arith.constant 0 : index
    %c0_0 = arith.constant 0 : index
    %0 = vector.load %arg1[%c0, %c0_0] : memref<8x128xf32, #tpu.memory_space<vmem>>, vector<8x128xf32>
    %c0_1 = arith.constant 0 : index
    %c0_2 = arith.constant 0 : index
    %1 = vector.load %arg2[%c0_1, %c0_2] : memref<1x128xf32, #tpu.memory_space<vmem>>, vector<1x128xf32>
    %c0_3 = arith.constant 0 : index
    %c0_4 = arith.constant 0 : index
    %2 = vector.load %arg3[%c0_3, %c0_4] : memref<1x128xf32, #tpu.memory_space<vmem>>, vector<1x128xf32>
    %cst = arith.constant dense<0.000000e+00> : vector<8xf32>
    %3 = vector.multi_reduction <add>, %0, %cst [1] : vector<8x128xf32> to vector<8xf32>
    %4 = vector.shape_cast %3 : vector<8xf32> to vector<8x1xf32>
    %cst_5 = arith.constant 1.280000e+02 : f32
    %5 = vector.broadcast %cst_5 : f32 to vector<8x1xf32>
    %6 = arith.divf %4, %5 : vector<8x1xf32>
    %7 = vector.broadcast %6 : vector<8x1xf32> to vector<8x128xf32>
    %8 = arith.subf %0, %7 : vector<8x128xf32>
    %9 = arith.mulf %8, %8 : vector<8x128xf32>
    %cst_6 = arith.constant dense<0.000000e+00> : vector<8xf32>
    %10 = vector.multi_reduction <add>, %9, %cst_6 [1] : vector<8x128xf32> to vector<8xf32>
    %11 = vector.shape_cast %10 : vector<8xf32> to vector<8x1xf32>
    %cst_7 = arith.constant 0.00787401571 : f32
    %12 = vector.broadcast %cst_7 : f32 to vector<8x1xf32>
    %13 = arith.mulf %11, %12 : vector<8x1xf32>
    %14 = math.sqrt %13 : vector<8x1xf32>
    %cst_8 = arith.constant 9.99999997E-7 : f32
    %15 = vector.broadcast %cst_8 : f32 to vector<8x1xf32>
    %16 = arith.addf %14, %15 : vector<8x1xf32>
    %17 = vector.broadcast %6 : vector<8x1xf32> to vector<8x128xf32>
    %18 = arith.subf %0, %17 : vector<8x128xf32>
    %19 = vector.broadcast %16 : vector<8x1xf32> to vector<8x128xf32>
    %20 = arith.divf %18, %19 : vector<8x128xf32>
    %21 = vector.broadcast %1 : vector<1x128xf32> to vector<8x128xf32>
    %22 = arith.mulf %21, %20 : vector<8x128xf32>
    %23 = vector.broadcast %2 : vector<1x128xf32> to vector<8x128xf32>
    %24 = arith.addf %22, %23 : vector<8x128xf32>
    %c0_9 = arith.constant 0 : index
    %c0_10 = arith.constant 0 : index
    %25 = vector.load %arg4[%c0_9, %c0_10] : memref<8x128xf32, #tpu.memory_space<vmem>>, vector<8x128xf32>
    tpu.vector_store %arg4[%c0_9, %c0_10], %24 {strides = array<i32>} : memref<8x128xf32, #tpu.memory_space<vmem>>, vector<8x128xf32>,
    return
  }
  func.func @transform_0(%arg0: i32) -> (i32, i32) {
    %c0_i32 = arith.constant 0 : i32
    %c0_i32_0 = arith.constant 0 : i32
    return %arg0, %c0_i32 : i32, i32
  }
  func.func @transform_1(%arg0: i32) -> (i32, i32) {
    %c0_i32 = arith.constant 0 : i32
    %c0_i32_0 = arith.constant 0 : i32
    %c0_i32_1 = arith.constant 0 : i32
    return %c0_i32, %c0_i32_0 : i32, i32
  }
  func.func @transform_2(%arg0: i32) -> (i32, i32) {
    %c0_i32 = arith.constant 0 : i32
    %c0_i32_0 = arith.constant 0 : i32
    %c0_i32_1 = arith.constant 0 : i32
    return %c0_i32, %c0_i32_0 : i32, i32
  }
  func.func @transform_3(%arg0: i32) -> (i32, i32) {
    %c0_i32 = arith.constant 0 : i32
    %c0_i32_0 = arith.constant 0 : i32
    return %arg0, %c0_i32 : i32, i32
  }
}

</mosaic_0001>

<bundles_post_ra>
// kernel: tpu_custom_call.1
= control target key start
LH: loop header
LB: loop body
LE: loop exit
PB: predicated region body
PF: predicated region fallthrough
CT: control target
= control target key end

     0   :  { %8 = vsyncpa [#allocation3], 0  ;;  %s733_s0 = inlined_call_operand.hbm [shape: f32[16,128], index: 0, kind: input, shape index: {}]   ;;  %s734_s1 = inlined_call_operand.hbm [shape: f32[1,128], index: 1, kind: input, shape index: {}]   ;;  %s735_s2 = inlined_call_operand.vmem [shape: f32[1,128], index: 2, kind: input, shape index: {}]   ;;  %s736_s3 = inlined_call_operand.hbm [shape: f32[16,128], index: 3, kind: output, shape index: {}]  }
   0x1   :  { %10 = vsyncpa [#allocation3 + $0x1], 0 }
   0x2   :  { %11 = vsyncpa [#allocation6], 0 }
   0x3   :  { %12 = vsyncpa [#allocation4], 0 }
   0x4   :  { %14 = vsyncpa [#allocation4 + $0x1], 0  ;;  %s588_s12 = smov 0   ;;  %s590_s13 = smov 0  }
   0x5   :  { %s592_s14 = smov 0   ;;  %s594_s15 = smov 0  }
   0x6 LB: > { %s609_s16 = sadd.s32 4294967295, %s564_s15   ;;  %s354_s17 = sadd.s32 4294967294, %s564_s15   ;;  %s564_s15 = sphi %s594_s15, %s746_s15   ;;  %s560_s14 = sphi %s592_s14, %s745_s14   ;;  %s556_s13 = sphi %s590_s13, %s744_s13   ;;  %s552_s12 = sphi %s588_s12, %s743_s12  }
   0x7   : > { %p40_p0 = scmp.ne.s32.totalorder %s556_s13, %s552_s12  ;;  %p41_p1 = scmp.eq.s32.totalorder %s609_s16, 0 }
   0x8   : > { %p106_p2 = scmp.eq.s32.totalorder %s609_s16, 1  ;;  %p112_p3 = scmp.eq.s32.totalorder %s354_s17, 1 }
   0x9   : > { %p618_p4 = por %p41_p1, %p40_p0  ;;  %p355_p5 = scmp.ge.s32.totalorder %s564_s15, 1 }
   0xa   : > { %p623_p6 = por %p112_p3, %p40_p0  ;;  %p119_p7 = scmp.lt.s32.totalorder %s564_s15, 3 }
   0xb   : > { %s131_s22 = sshll.u32 %s734_s1, 4  ;;  %s566_s24 = smov [#allocation5]   ;;  %s132_s22 = int_to_ptr.hbm [resolvable:$true] %s131_s22 }
   0xc   : > { %p631_p8 = pnand %p355_p5, %p119_p7  ;;  %s133_s25 = sshll.u32 %s566_s24, 4  ;;  %s134_s25 = int_to_ptr.vmem [resolvable:$true] %s133_s25 }
   0xd   : > { %s641_s26 = sadd.s32 1, %s564_s15   ;;  %s27_s27 = sadd.s32 1, %s560_s14 }
   0xe   : > { %p376_p10 = pneg %p631_p8  ;;  %s24_s28 = ssub.s32 %s564_s15, %s641_s26 }
   0xf   : > { %p25_p12 = scmp.eq.s32.totalorder %s24_s28, 0  ;;  %p34_p13 = scmp.ne.s32.totalorder %s560_s14, %s556_s13 }
  0x10   : > { %p377_p11 = pnand %p376_p10, %p41_p1  ;;  %p35_p0 = scmp.eq.s32.totalorder %s564_s15, 0 }
  0x11   : > { %s650_s29 = scalar_select %p25_p12, %s560_s14, %s27_s27  }
  0x12   : > { %379 = dma.hbm_to_vmem [thread:$0]  (!%p377_p11), %s132_s22, 16, %s134_s25, [#allocation6]  }
  0x13   : > { %p654_p3 = por %p106_p2, %p34_p13  ;;  %p389_p5 = scmp.lt.s32.totalorder %s564_s15, 2 }
  0x14   : > { %s147_s4 = sand.u32 1, %s560_s14   ;;  %s359_s5 = sshll.u32 %s564_s15, 3 }
  0x15   : > { %p36_p7 = por %p35_p0, %p34_p13  ;;  %s358_s6 = sshll.u32 %s147_s4, 3 }
  0x16   : > { %s155_s9 = scalar_lea.hbm %s733_s0, %s359_s5  ;;  %s151_s11 = scalar_lea.vmem [#allocation2], %s358_s6 }
  0x17   : > { %s157_s10 = sshll.u32 %s155_s9, 4  ;;  %s159_s17 = sshll.u32 %s151_s11, 4  ;;  %s158_s10 = int_to_ptr.hbm [resolvable:$true] %s157_s10  ;;  %s160_s17 = int_to_ptr.vmem [resolvable:$true] %s159_s17 }
  0x18   : > { %p664_p10 = pnand %p389_p5, %p36_p7  ;;  %s148_s21 = scalar_lea.sflag [#allocation3], %s147_s4 }
  0x19   : > { %s464_s22 = sshra.s32 %s158_s10, 4  ;;  %s471_s28 = scalar_lea.hbm %s733_s0, 16  ;;  %s465_s22 = int_to_ptr.hbm [resolvable:$true] %s464_s22 }
  0x1a   : > { %s466_s24 = scalar_lea.hbm %s465_s22, 8  ;;  %p468_p11 = pneg %p664_p10 }
  0x1b   : > { %p467_p2 = scmp.ne.s32.totalorder %s465_s22, %s466_s24  ;;  %p472_p0 = scmp.lt.s32.totalorder %s465_s22, %s733_s0 }
  0x1c   : > { %p473_p5 = scmp.lt.s32.totalorder %s471_s28, %s466_s24 }
  0x1d   : > { %p469_p12 = pnand %p468_p11, %p467_p2 }
  0x1e   : > { %p474_p7 = por %p473_p5, %p472_p0 }
  0x1f   : > { %p470_p13 = pneg %p469_p12 }
  0x21   : > { %p475_p9 = pnand %p474_p7, %p470_p13 }
  0x23   : > { %478 = shalt.err (!%p475_p9)
}
  0x24   : > { %383 = dma.hbm_to_vmem [thread:$0]  (!%p664_p10), %s158_s10, 128, %s160_s17, %s148_s21  }
  0x25   : > { %168 = sbr.rel (%p631_p8) target bundleno = 335 (0x14f), region = 32  ;;  %s681_s4 = sand.u32 (!%p631_p8), 1, %s556_s13  }
  0x26   : > { %s361_s7 = sshll.u32 (!%p631_p8), %s681_s4, 3  ;;  %s171_s8 = scalar_lea.sflag (!%p631_p8), [#allocation3], %s681_s4 }
  0x27   : > { %s174_s9 = scalar_lea.vmem (!%p631_p8), [#allocation2], %s361_s7 }
  0x2a   : > { %539 = dma.done.wait (%p618_p4), %s171_s8, 128  }
  0x2b   : > { %541 = vsyncadd (%p618_p4), %s171_s8, 4294967168 }
  0x2c   : > { %543 = dma.done.wait (%p41_p1), [#allocation6], 16  }
  0x2d   : > { %545 = vsyncadd (%p41_p1), [#allocation6], 4294967280  ;;  %v203_v0 = vld [vmem:[%s174_s9] sm:$0xff]  ;;  %v567_v1 = vmov 128.0   ;;  %s365_s18 = sshll.u32 %s609_s16, 3  ;;  %s202_s16 = scalar_lea.vmem [#allocation7], %s361_s7 }
  0x2e   : > { %206 = vadd.xlane.f32.xlu0 %v203_v0  ;;  %428 = vrcp.f32 %v567_v1  ;;  %v426_v34 = vld [vmem:[#allocation5] ss:$0 sm:$0xff]  ;;  %s269_s11 = scalar_lea.hbm %s736_s3, %s365_s18  ;;  %v427_v37 = vld [vmem:[%s735_s2] ss:$0 sm:$0xff]  ;;  %s271_s21 = sshll.u32 %s202_s16, 4  ;;  %s272_s21 = int_to_ptr.vmem [resolvable:$true] %s271_s21 }
  0x2f   : > { %s273_s22 = sshll.u32 %s269_s11, 4  ;;  %s259_s24 = scalar_lea.sflag [#allocation4], %s681_s4  ;;  %s274_s22 = int_to_ptr.hbm [resolvable:$true] %s273_s22 }
  0x30   : > { %s508_s25 = sshra.s32 %s274_s22, 4  ;;  %s514_s6 = scalar_lea.hbm %s736_s3, 16  ;;  %s509_s25 = int_to_ptr.hbm [resolvable:$true] %s508_s25 }
  0x31   : > { %s510_s27 = scalar_lea.hbm %s509_s25, 8  ;;  %p515_p9 = scmp.lt.s32.totalorder %s509_s25, %s736_s3 }
  0x32   : > { %p511_p1 = scmp.ne.s32.totalorder %s509_s25, %s510_s27  ;;  %p516_p10 = scmp.lt.s32.totalorder %s514_s6, %s510_s27 }
  0x34   : > { %v429_v2 = vpop.eup %428  ;;  %p512_p4 = pnand %p511_p1, %p654_p3  ;;  %p517_p2 = por %p516_p10, %p515_p9 }
  0x35   : > { %v209_v3 = vmul.f32 128.0, %v429_v2  ;;  %vm213_vm0 = vweird.f32 %v429_v2 }
  0x36   : > { %p513_p8 = pneg %p512_p4 }
  0x37   : > { %v210_v4 = vsub.f32 1.0, %v209_v3 }
  0x38   : > { %p518_p11 = pnand %p517_p2, %p513_p8 }
  0x39   : > { %v211_v5 = vmul.f32 %v429_v2, %v210_v4 }
  0x3b   : > { %v212_v6 = vadd.f32 %v429_v2, %v211_v5 }
  0x3d   : > { %v214_v7 = vsel %vm213_vm0, %v429_v2, %v212_v6 }
  0xa1   : > { %v207_v8 = vpop.xlane.xlu0 %206 }
  0xa2   : > { %v215_v9 = vmul.f32 %v214_v7, %v207_v8 }
  0xa4   : > { %v216_v10 = vsub.f32 %v203_v0, %v215_v9 }
  0xa6   : > { %v217_v11 = vmul.f32 %v216_v10, %v216_v10 }
  0xa8   : > { %218 = vadd.xlane.f32.xlu0 %v217_v11 }
 0x11b   : > { %v219_v12 = vpop.xlane.xlu0 %218 }
 0x11c   : > { %v220_v13 = vmul.f32 0.007874016, %v219_v12 }
 0x11e   : > { %430 = vrsqrt.f32 %v220_v13  ;;  %vm228_vm1 = vcmp.eq.f32.partialorder %v220_v13, inf  ;;  %v231_v21 = vand.u32 2147483648, %v220_v13  ;;  %vm230_vm2 = vcmp.eq.f32.partialorder %v220_v13, 0.0 }
 0x124   : > { %v431_v14 = vpop.eup %430 }
 0x125   : > { %v222_v15 = vmul.f32 %v431_v14, %v220_v13 }
 0x127   : > { %v223_v16 = vmul.f32 %v431_v14, %v222_v15 }
 0x129   : > { %v224_v17 = vmul.f32 0.5, %v223_v16 }
 0x12b   : > { %v225_v18 = vsub.f32 1.5, %v224_v17 }
 0x12d   : > { %v226_v19 = vmul.f32 %v431_v14, %v225_v18 }
 0x12f   : > { %v227_v20 = vmul.f32 %v226_v19, %v220_v13 }
 0x131   : > { %v229_v22 = vsel %vm228_vm1, %v220_v13, %v227_v20 }
 0x132   : > { %v232_v23 = vsel %vm230_vm2, %v231_v21, %v229_v22 }
 0x133   : > { %v233_v24 = vadd.f32 1e-06, %v232_v23 }
 0x135   : > { %432 = vrcp.f32 %v233_v24  ;;  %v245_v28 = vand.u32 2147483648, %v233_v24  ;;  %v243_v30 = vand.u32 2147483647, %v233_v24  ;;  %vm239_vm4 = vweird.f32 %v233_v24 }
 0x137   : > { %v246_v32 = vor.u32 1.1754944e-38, %v245_v28  ;;  %vm244_vm6 = vcmp.eq.f32.partialorder %v243_v30, 8.507059e+37 }
 0x13b   : > { %v433_v25 = vpop.eup %432 }
 0x13c   : > { %v235_v26 = vmul.f32 %v433_v25, %v233_v24  ;;  %vm240_vm3 = vweird.f32 %v433_v25 }
 0x13d   : > { %vm241_vm5 = vmor %vm239_vm4, %vm240_vm3 }
 0x13e   : > { %v236_v27 = vsub.f32 1.0, %v235_v26 }
 0x140   : > { %v237_v29 = vmul.f32 %v433_v25, %v236_v27 }
 0x142   : > { %v238_v31 = vadd.f32 %v433_v25, %v237_v29 }
 0x144   : > { %v242_v33 = vsel %vm241_vm5, %v433_v25, %v238_v31 }
 0x145   : > { %v247_v35 = vsel %vm244_vm6, %v246_v32, %v242_v33 }
 0x146   : > { %v248_v36 = vmul.f32 %v247_v35, %v216_v10 }
 0x148   : > { %v252_v38 = vmul.f32 %v426_v34, %v248_v36 }
 0x14a   : > { %v256_v39 = vadd.f32 %v427_v37, %v252_v38 }
 0x14c   : > { %257 = vst [vmem:[%s202_s16] sm:$0xff] %v256_v39 }
 0x14d   : > { %521 = shalt.err (!%p518_p11)
}
 0x14e   : > { %374 = dma.vmem_to_hbm [thread:$0]  (%p654_p3), %s272_s21, 128, %s274_s22, %s259_s24  }
 0x14f PF: > { %s285_s4 = sand.u32 1, %s552_s12   ;;  %p742_p12 = scmp.ge.s32.totalorder %s564_s15, 2 }
 0x150   : > { %s286_s9 = scalar_lea.sflag [#allocation4], %s285_s4 }
 0x151   : > { %p385_p13 = pnand %p742_p12, %p623_p6 }
 0x153   : > { %p386_p0 = pneg %p385_p13 }
 0x155   : > { %547 = dma.done.wait (%p386_p0), %s286_s9, 128  }
 0x156   : > { %549 = vsyncadd (%p386_p0), %s286_s9, 4294967168  ;;  %p17_p5 = scmp.ge.s32.totalorder %s641_s26, 4   ;;  %s743_s12 = smov %s556_s13 }
 0x157   : > { %s744_s13 = smov %s560_s14  ;;  %s745_s14 = smov %s650_s29 }
 0x158   : > { %s746_s15 = smov %s641_s26  ;;  %19 = sbr.rel (!%p17_p5) target bundleno = 6 (0x6), region = 81 }
 0x15d   :  { %292 = vsyncpa [#allocation3], 1 }
 0x15e   :  { %294 = vsyncpa [#allocation3 + $0x1], 1 }
 0x15f   :  { %295 = vsyncpa [#allocation6], 1 }
 0x160   :  { %296 = vsyncpa [#allocation4], 1 }
 0x161   :  { %298 = vsyncpa [#allocation4 + $0x1], 1 }

</bundles_post_ra>
